<compile_context>
chip_gen: v6e
topology: v6e:2x2x1
jax: 0.10.0
libtpu: 0.0.40
codegen_flags: <defaults>
</compile_context>

<pallas_src>
import jax
import jax.numpy as jnp
from jax.experimental import pallas as pl
from jax.experimental.pallas import tpu as pltpu


def _round_up(x, m):
    return (x + m - 1) // m * m


def critic_kernel(x_ref, w1_ref, c_ref, b2_ref, o_ref):
    # Linear 1 on the MXU (f32 accumulate); bias + tanh on VPU/EUP.
    h = jnp.dot(x_ref[...], w1_ref[...], preferred_element_type=jnp.float32)
    h = jnp.tanh(h + c_ref[0:1, :])                        # (TB, H)
    # Linear 2 (out_features=1): VPU elementwise multiply + XLU lane reduce.
    y = jnp.sum(h * c_ref[1:2, :], axis=-1) + b2_ref[0]    # (TB,)
    # Lane-dense store: result rides the lanes -> unmasked vst, tiny output buffer.
    o_ref[...] = y[None, None, :].astype(o_ref.dtype)      # (1, 1, TB)


def critic_forward(h_i, w1, b1, w2, b2, *, block_b=512):
    """Critic forward pass.

    h_i: (B, H) activations.
    w1:  (H, H) stored as (in, out)   -> y = x @ w1 + b1  (== x @ W_pt.T + b)
    b1:  (H,) or (1, H)
    w2:  (H, 1) or (H,)               (second Linear, out_features=1)
    b2:  scalar / (1,) / (1, 1)
    Returns (B,) — matches PyTorch's `net(h_i).squeeze(-1)`.
    """
    B, H = h_i.shape
    dtype = h_i.dtype

    # Batch tile: whole batch if it fits one tile, else a multiple-of-8 tile.
    # Pallas handles the ragged last tile; invalid rows are dropped below.
    if B <= block_b:
        TB = B
    else:
        TB = _round_up(min(block_b, B), 8)
    num_tiles = (B + TB - 1) // TB

    # Pack the two tiny per-feature constants into one (2, H) input:
    # row 0 = b1, row 1 = w2 (halves constant DMA descriptors / buffers).
    consts = jnp.stack(
        [jnp.reshape(b1, (H,)), jnp.reshape(w2, (H,))], axis=0
    ).astype(dtype)
    b2_s = jnp.reshape(b2, (1,)).astype(jnp.float32)

    itemsize = jnp.dtype(dtype).itemsize
    cost = pl.CostEstimate(
        flops=2 * B * H * H + 4 * B * H,
        transcendentals=B * H,
        bytes_accessed=(B * H + H * H + 2 * H + 1) * itemsize
        + num_tiles * TB * itemsize,
    )

    out = pl.pallas_call(
        critic_kernel,
        out_shape=jax.ShapeDtypeStruct((num_tiles, 1, TB), dtype),
        grid=(num_tiles,),
        in_specs=[
            pl.BlockSpec((TB, H), lambda i: (i, 0)),             # x batch tile
            # TODO(synk): for large hidden sizes, block w1's output columns
            # (accumulate in VMEM scratch) and/or use pipeline_mode=pl.Buffered(1)
            # + vmem_limit_bytes so the resident weight fits v7x's 64 MiB VMEM
            # and v5e's 16 MiB scoped default. Irrelevant at H=32.
            pl.BlockSpec((H, H), lambda i: (0, 0)),              # w1 (resident)
            pl.BlockSpec((2, H), lambda i: (0, 0)),              # [b1; w2] rows
            pl.BlockSpec(memory_space=pltpu.MemorySpace.SMEM),   # b2 scalar
        ],
        out_specs=pl.BlockSpec((1, 1, TB), lambda i: (i, 0, 0)),
        compiler_params=pltpu.CompilerParams(
            dimension_semantics=("parallel",),
        ),
        cost_estimate=cost,
    )(h_i, w1, consts, b2_s)
    # squeeze(-1) + drop ragged-tile rows — glue, stays in plain JAX.
    return out.reshape(-1)[:B]


if __name__ == "__main__":
    # Small shapes implied by the module: batch=8, hidden_size=32
    B, H = 8, 32
    key = jax.random.PRNGKey(0)
    k_x, k_w1, k_b1, k_w2, k_b2 = jax.random.split(key, 5)

    # Deterministic synthetic parameters (shapes from nn.Linear(H,H) and nn.Linear(H,1)),
    # stored as (in, out) so the kernel computes x @ W + b.
    h_i = jax.random.normal(k_x, (B, H), dtype=jnp.float32)
    w1 = jax.random.normal(k_w1, (H, H), dtype=jnp.float32) * 0.1
    b1 = jax.random.normal(k_b1, (H,), dtype=jnp.float32) * 0.1
    w2 = jax.random.normal(k_w2, (H, 1), dtype=jnp.float32) * 0.1
    b2 = jax.random.normal(k_b2, (1,), dtype=jnp.float32) * 0.1

    out = critic_forward(h_i, w1, b1, w2, b2)
    jax.block_until_ready(out)

    # Reference (plain JAX) check of the forward-pass semantics.
    ref = (jnp.tanh(h_i @ w1 + b1[None, :]) @ w2 + b2)[:, 0]
    assert out.shape == (B,), out.shape
    assert jnp.allclose(out, ref, atol=1e-5, rtol=1e-5), (out, ref)

    # Larger, multi-tile, ragged batch (grid > 1, last tile partial).
    B2 = 600
    h_big = jax.random.normal(jax.random.PRNGKey(1), (B2, H), dtype=jnp.float32)
    out_big = critic_forward(h_big, w1, b1, w2, b2)
    jax.block_until_ready(out_big)
    ref_big = (jnp.tanh(h_big @ w1 + b1[None, :]) @ w2 + b2)[:, 0]
    assert out_big.shape == (B2,), out_big.shape
    assert jnp.allclose(out_big, ref_big, atol=1e-5, rtol=1e-5)

    print("KERNEL_OK")
</pallas_src>

<mosaic_0001>
module attributes {stable_mosaic.version = 11 : i64} {
  func.func @critic_kernel(%arg0: i32, %arg1: memref<8x32xf32, #tpu.memory_space<vmem>>, %arg2: memref<32x32xf32, #tpu.memory_space<vmem>>, %arg3: memref<2x32xf32, #tpu.memory_space<vmem>>, %arg4: memref<1xf32, #tpu.memory_space<smem>>, %arg5: memref<1x1x8xf32, #tpu.memory_space<vmem>>) attributes {dimension_semantics = [#tpu.dimension_semantics<parallel>], iteration_bounds = array<i64: 1>, scalar_prefetch = 0 : i64, scratch_operands = 0 : i64, tpu.core_type = #tpu.core_type<tc>, window_params = [{transform_indices = @transform_0, window_bounds = array<i64: 8, 32>}, {pipeline_mode = #tpu.pipeline_mode<synchronous>, transform_indices = @transform_1, window_bounds = array<i64: 32, 32>}, {pipeline_mode = #tpu.pipeline_mode<synchronous>, transform_indices = @transform_2, window_bounds = array<i64: 2, 32>}, {transform_indices = @transform_3, window_bounds = array<i64: 1>}, {transform_indices = @transform_4, window_bounds = array<i64: 1, 1, 8>}]} {
    %c0 = arith.constant 0 : index
    %c0_0 = arith.constant 0 : index
    %0 = vector.load %arg1[%c0, %c0_0] : memref<8x32xf32, #tpu.memory_space<vmem>>, vector<8x32xf32>
    %c0_1 = arith.constant 0 : index
    %c0_2 = arith.constant 0 : index
    %1 = vector.load %arg2[%c0_1, %c0_2] : memref<32x32xf32, #tpu.memory_space<vmem>>, vector<32x32xf32>
    %cst = arith.constant dense<0.000000e+00> : vector<8x32xf32>
    %2 = tpu.matmul %0, %1, %cst {dimension_numbers = #tpu.dot_dimension_numbers<[1], [0], [0], [1], [0, 0, 1, 1], [], []>} : vector<8x32xf32>, vector<32x32xf32>, vector<8x32xf32> -> vector<8x32xf32>
    %c0_3 = arith.constant 0 : index
    %c0_4 = arith.constant 0 : index
    %3 = vector.load %arg3[%c0_3, %c0_4] : memref<2x32xf32, #tpu.memory_space<vmem>>, vector<1x32xf32>
    %4 = vector.broadcast %3 : vector<1x32xf32> to vector<8x32xf32>
    %5 = arith.addf %2, %4 : vector<8x32xf32>
    %6 = math.tanh %5 : vector<8x32xf32>
    %c1 = arith.constant 1 : index
    %c0_5 = arith.constant 0 : index
    %7 = vector.load %arg3[%c1, %c0_5] : memref<2x32xf32, #tpu.memory_space<vmem>>, vector<1x32xf32>
    %8 = vector.broadcast %7 : vector<1x32xf32> to vector<8x32xf32>
    %9 = arith.mulf %6, %8 : vector<8x32xf32>
    %cst_6 = arith.constant dense<0.000000e+00> : vector<8xf32>
    %10 = vector.multi_reduction <add>, %9, %cst_6 [1] : vector<8x32xf32> to vector<8xf32>
    %c0_7 = arith.constant 0 : index
    %11 = memref.load %arg4[%c0_7] : memref<1xf32, #tpu.memory_space<smem>>
    %12 = vector.broadcast %11 : f32 to vector<8xf32>
    %13 = arith.addf %10, %12 : vector<8xf32>
    %14 = vector.shape_cast %13 : vector<8xf32> to vector<1x1x8xf32>
    %c0_8 = arith.constant 0 : index
    %c0_9 = arith.constant 0 : index
    %c0_10 = arith.constant 0 : index
    %15 = vector.load %arg5[%c0_8, %c0_9, %c0_10] : memref<1x1x8xf32, #tpu.memory_space<vmem>>, vector<1x1x8xf32>
    tpu.vector_store %arg5[%c0_8, %c0_9, %c0_10], %14 {strides = array<i32>} : memref<1x1x8xf32, #tpu.memory_space<vmem>>, vector<1x1x8xf32>,
    return
  }
  func.func @transform_0(%arg0: i32) -> (i32, i32) {
    %c0_i32 = arith.constant 0 : i32
    %c0_i32_0 = arith.constant 0 : i32
    return %arg0, %c0_i32 : i32, i32
  }
  func.func @transform_1(%arg0: i32) -> (i32, i32) {
    %c0_i32 = arith.constant 0 : i32
    %c0_i32_0 = arith.constant 0 : i32
    %c0_i32_1 = arith.constant 0 : i32
    return %c0_i32, %c0_i32_0 : i32, i32
  }
  func.func @transform_2(%arg0: i32) -> (i32, i32) {
    %c0_i32 = arith.constant 0 : i32
    %c0_i32_0 = arith.constant 0 : i32
    %c0_i32_1 = arith.constant 0 : i32
    return %c0_i32, %c0_i32_0 : i32, i32
  }
  func.func @transform_3(%arg0: i32) -> i32 {
    %c0_i32 = arith.constant 0 : i32
    %c0_i32_0 = arith.constant 0 : i32
    return %c0_i32 : i32
  }
  func.func @transform_4(%arg0: i32) -> (i32, i32, i32) {
    %c0_i32 = arith.constant 0 : i32
    %c0_i32_0 = arith.constant 0 : i32
    %c0_i32_1 = arith.constant 0 : i32
    return %arg0, %c0_i32, %c0_i32_0 : i32, i32, i32
  }
}

</mosaic_0001>

<bundles_post_ra>
// kernel: tpu_custom_call.1
= control target key start
LH: loop header
LB: loop body
LE: loop exit
PB: predicated region body
PF: predicated region fallthrough
CT: control target
= control target key end

     0   :  { %10 = vsyncpa [#allocation4], 0  ;;  %s312_s0 = inlined_call_operand.hbm [shape: f32[8,32], index: 0, kind: input, shape index: {}]   ;;  %s313_s1 = inlined_call_operand.hbm [shape: f32[32,32], index: 1, kind: input, shape index: {}]   ;;  %s314_s2 = inlined_call_operand.vmem [shape: f32[2,32], index: 2, kind: input, shape index: {}]   ;;  %s315_s3 = inlined_call_operand.<no memory space> [shape: f32[1], index: 3, kind: input, shape index: {}]   ;;  %s316_s4 = inlined_call_operand.hbm [shape: f32[1,1,8], index: 4, kind: output, shape index: {}]  }
   0x1   :  { %11 = vsyncpa [#allocation7], 0 }
   0x2   :  { %12 = vsyncpa [#allocation5], 0  ;;  %s262_s15 = smov [#allocation3]   ;;  %s263_s17 = smov [#allocation6]  }
   0x3   :  { %s19_s16 = sshll.u32 %s262_s15, 4  ;;  %s28_s18 = sshll.u32 %s263_s17, 4  ;;  %s20_s16 = int_to_ptr.vmem [resolvable:$true] %s19_s16  ;;  %s29_s18 = int_to_ptr.vmem [resolvable:$true] %s28_s18 }
   0x4   :  { %s204_s19 = scalar_lea.vmem %s20_s16, 128  ;;  %p209_p1 = scmp.lt.s32.totalorder %s20_s16, %s20_s16 }
   0x5   :  { %p205_p0 = scmp.ne.s32.totalorder %s20_s16, %s204_s19  ;;  %p210_p2 = scmp.lt.s32.totalorder %s204_s19, %s204_s19 }
   0x7   :  { %p211_p3 = por %p210_p2, %p209_p1 }
   0x9   :  { %p212_p4 = pnand %p211_p3, %p205_p0 }
   0xb   :  { %215 = shalt.err (!%p212_p4)
}
   0xc   :  { %22 = dma.hbm_to_vmem [thread:$0]  %s312_s0, 128, %s20_s16, [#allocation4]  }
   0xd   :  { %s224_s22 = scalar_lea.vmem %s29_s18, 512  ;;  %p229_p6 = scmp.lt.s32.totalorder %s29_s18, %s29_s18 }
   0xe   :  { %p225_p5 = scmp.ne.s32.totalorder %s29_s18, %s224_s22  ;;  %p230_p7 = scmp.lt.s32.totalorder %s224_s22, %s224_s22 }
  0x10   :  { %p231_p8 = por %p230_p7, %p229_p6 }
  0x12   :  { %p232_p9 = pnand %p231_p8, %p225_p5 }
  0x14   :  { %235 = shalt.err (!%p232_p9)
}
  0x15   :  { %s264_s23 = smov 128   ;;  %s265_s24 = smov 8  }
  0x16   :  { %34 = dma.hbm_to_vmem [thread:$0]  %s313_s1, 512, %s29_s18, [#allocation7], %s264_s23, %s264_s23, %s265_s24  }
  0x17   :  { %256 = dma.done.wait [#allocation4], 128  }
  0x18   :  { %257 = vsyncadd [#allocation4], 4294967168 }
  0x19   :  { %258 = dma.done.wait [#allocation7], 512  }
  0x1a   :  { %259 = vsyncadd [#allocation7], 4294966784  ;;  %v266_v0 = vmov 0.0   ;;  %vm267_vm0 = vmmov 0   ;;  %v49_v1 = vld [vmem:[#allocation6 + $0x18] sm:$0xff]  ;;  %v48_v2 = vld [vmem:[#allocation6 + $0x10] sm:$0xff]  ;;  %v143_v14 = vlaneseq  ;;  %v140_v17 = vstv %s315_s3 }
  0x1b   :  { %176 = vmatprep.subr.mxu0 %v266_v0  ;;  %184 = vmatprep.mubr.msk.f32.mxu0 %vm267_vm0, %v266_v0  ;;  %v47_v3 = vld [vmem:[#allocation6 + $0x8] sm:$0xff]  ;;  %v46_v4 = vld [vmem:[#allocation6] sm:$0xff]  ;;  %v45_v5 = vld [vmem:[#allocation3] sm:$0xff]  ;;  %vm55_vm1 = vcmask 261120   ;;  %s268_s5 = smov [#allocation8]   ;;  %vm150_vm2 = vcmask 57344  }
  0x1c   :  { %177 = vmatpush3.msra.mxu0 %v49_v1  ;;  %v168_v6 = vld [vmem:[%s314_s2] ss:$0 sm:$0xff]  ;;  %v170_v10 = vld [vmem:[%s314_s2 + $0x1] ss:$0 sm:$0xff]  ;;  %v144_v15 = vand.u32 127, %v143_v14  ;;  %v146_v16 = vshrl.u32 %v143_v14, 7 }
  0x1d   :  { %178 = vmatprep.subr.mxu0 %v266_v0  ;;  %s158_s6 = sshll.u32 %s268_s5, 4  ;;  %s159_s6 = int_to_ptr.vmem [resolvable:$true] %s158_s6 }
  0x1e   :  { %179 = vmatpush3.msra.mxu0 %v48_v2  ;;  %v147_v18 = vsub.s32 %v144_v15, %v146_v16  ;;  %s236_s2 = scalar_lea.vmem %s159_s6, 16  ;;  %s240_s7 = scalar_lea.vmem %s159_s6, 32 }
  0x1f   :  { %180 = vmatprep.subr.mxu0 %v266_v0  ;;  %p237_p10 = scmp.ne.s32.totalorder %s159_s6, %s236_s2  ;;  %p241_p11 = scmp.lt.s32.totalorder %s159_s6, %s159_s6 }
  0x20   :  { %181 = vmatpush3.msra.mxu0 %v47_v3  ;;  %p242_p12 = scmp.lt.s32.totalorder %s240_s7, %s236_s2 }
  0x21   :  { %182 = vmatprep.subr.mxu0 %v266_v0 }
  0x22   :  { %183 = vmatpush3.msra.mxu0 %v46_v4  ;;  %p243_p13 = por %p242_p12, %p241_p11 }
  0x23   :  { %185 = vmatmul.mubr.msk.f32.vlgmr.msra.gmra.mxu0 %vm55_vm1, %v45_v5 }
  0x24   :  { %p244_p0 = pnand %p243_p13, %p237_p10 }
  0xe3   :  { %v125_v7 = vpop.f32.mrf.mxu0 }
  0xe4   :  { %v126_v8 = vadd.f32 %v168_v6, %v125_v7 }
  0xe5   :  { %v186_v9 = vpop.f32.mrf.mxu0 }
  0xe6   :  { %194 = vtanh.f32 %v126_v8 }
  0xf3   :  { %v195_v11 = vpop.eup %194 }
  0xf4   :  { %v135_v12 = vmul.f32 %v195_v11, %v170_v10 }
  0xf6   :  { %v136_v13 = vsel %vm55_vm1, %v135_v12, 0.0 }
  0xf7   :  { %137 = vadd.xlane.f32.xlu0 %v136_v13 }
 0x180   :  { %v138_v19 = vpop.xlane.xlu0 %137 }
 0x181   :  { %v141_v20 = vadd.f32 %v140_v17, %v138_v19 }
 0x183   :  { %v148_v21 = vrot.slane %v141_v20, %v147_v18 }
 0x185   :  { %151 = vst.msk [vmem:[#allocation8] sm:$0x1] %vm150_vm2, %v148_v21 }
 0x186   :  { %247 = shalt.err (!%p244_p0)
}
 0x187   :  { %161 = dma.vmem_to_hbm [thread:$0]  %s159_s6, 16, %s316_s4, [#allocation5]  }
 0x188   :  { %260 = dma.done.wait [#allocation5], 16  }
 0x189   :  { %261 = vsyncadd [#allocation5], 4294967280 }
 0x18a   :  { %165 = vsyncpa [#allocation4], 1 }
 0x18b   :  { %166 = vsyncpa [#allocation7], 1 }
 0x18c   :  { %167 = vsyncpa [#allocation5], 1 }

</bundles_post_ra>
